<compile_context>
chip_gen: v6e
topology: v6e:2x2x1
jax: 0.10.0
libtpu: 0.0.40
codegen_flags: <defaults>
</compile_context>

<pallas_src>
import jax
import jax.numpy as jnp
from jax.experimental import pallas as pl
from jax.experimental.pallas import tpu as pltpu

VOCAB = 31          # nn.Embedding(31, 256)
VOCAB_PAD = 32      # padded -> clean K dim for the counts @ embed matmul
EMB = 256
H1 = 128
H2 = 128
H3 = 128
H4 = 64
H4_PAD = 128        # fc4 out / fc5 in padded with zeros -> (8,128) aligned
OUT = 1

MATMUL_DTYPE = jnp.bfloat16   # MXU operand dtype (accumulation stays f32)


def bid_kernel(landlord_ref, embed_ref,
               w1_ref, b1_ref, w2_ref, b2_ref, w3_ref, b3_ref,
               w4_ref, b4_ref, w5_ref, b5_ref,
               out_ref):
    TB, L = landlord_ref.shape

    # --- embedding lookup + mean over seq, built fully in-kernel -------------
    # counts[b, v] = #occurrences of vocab id v in row b.  The 1/L mean scale
    # is folded into the (padded) embedding table at parameter-prep time.
    lane_ids = jax.lax.broadcasted_iota(jnp.int32, (TB, VOCAB_PAD), 1)
    counts = jnp.zeros((TB, VOCAB_PAD), jnp.float32)
    for l in range(L):                                   # L small & static
        counts = counts + (lane_ids == landlord_ref[:, l:l + 1]).astype(jnp.float32)

    x = jnp.dot(counts.astype(embed_ref.dtype), embed_ref[...],
                preferred_element_type=jnp.float32)      # (TB, 256) f32

    # --- MLP: bf16 MXU operands, f32 accumulate, f32 VPU elementwise ---------
    h = jnp.dot(x.astype(w1_ref.dtype), w1_ref[...],
                preferred_element_type=jnp.float32) + b1_ref[...]
    h = jnp.maximum(h, 0.0)                              # (TB, 128)

    h = jnp.dot(h.astype(w2_ref.dtype), w2_ref[...],
                preferred_element_type=jnp.float32) + b2_ref[...]
    h = jnp.maximum(h, 0.0)                              # (TB, 128)

    h = jnp.dot(h.astype(w3_ref.dtype), w3_ref[...],
                preferred_element_type=jnp.float32) + b3_ref[...]
    h = jnp.maximum(h, 0.0)                              # (TB, 128)

    h = jnp.dot(h.astype(w4_ref.dtype), w4_ref[...],
                preferred_element_type=jnp.float32) + b4_ref[...]
    h = jnp.maximum(h, 0.0)                              # (TB, 128) zero-padded

    # fc5 has N=1: VPU multiply + cross-lane reduce instead of a wasted MXU pass.
    z = jnp.sum(h * w5_ref[...], axis=-1, keepdims=True) + b5_ref[...]   # (TB, 1)

    # sigmoid: exp and approx reciprocal both land on the otherwise-idle EUP.
    out_ref[...] = pl.reciprocal(1.0 + jnp.exp(-z), approx=True)


def _round_up(x, m):
    return ((x + m - 1) // m) * m


def init_params(key):
    """Deterministic synthetic f32 parameters (shapes from Bid.__init__).

    Linear weights stored transposed (in, out) so the math is x @ W;
    biases stored as (1, out) rows.
    """
    ks = jax.random.split(key, 11)

    def w(k, shape, scale=0.05):
        return (scale * jax.random.normal(k, shape)).astype(jnp.float32)

    embed = w(ks[0], (VOCAB, EMB))
    w1 = w(ks[1], (EMB, H1)); b1 = w(ks[2], (1, H1))
    w2 = w(ks[3], (H1, H2));  b2 = w(ks[4], (1, H2))
    w3 = w(ks[5], (H2, H3));  b3 = w(ks[6], (1, H3))
    w4 = w(ks[7], (H3, H4));  b4 = w(ks[8], (1, H4))
    w5 = w(ks[9], (H4, OUT)); b5 = w(ks[10], (1, OUT))
    return (embed, w1, b1, w2, b2, w3, b3, w4, b4, w5, b5)


def prepare_params(params, seq_len):
    """One-time transform of f32 master params into kernel layout.

    * embedding padded 31->32 rows, pre-scaled by 1/L (mean folded in), bf16
    * fc1..fc4 weights (in, out) bf16; fc4 padded 64->128 zero output cols
    * fc5 weight as a zero-padded (1, 128) f32 row (consumed on the VPU)
    * biases stay f32 (elementwise math is f32 on all chip generations)
    """
    (embed, w1, b1, w2, b2, w3, b3, w4, b4, w5, b5) = params

    embed_p = jnp.zeros((VOCAB_PAD, EMB), jnp.float32).at[:VOCAB].set(embed)
    embed_p = (embed_p / float(seq_len)).astype(MATMUL_DTYPE)

    w4_p = jnp.zeros((H3, H4_PAD), jnp.float32).at[:, :H4].set(w4)
    b4_p = jnp.zeros((1, H4_PAD), jnp.float32).at[:, :H4].set(b4)
    w5_row = jnp.zeros((1, H4_PAD), jnp.float32).at[:, :H4].set(w5.T)

    return (embed_p,
            w1.astype(MATMUL_DTYPE), b1,
            w2.astype(MATMUL_DTYPE), b2,
            w3.astype(MATMUL_DTYPE), b3,
            w4_p.astype(MATMUL_DTYPE), b4_p,
            w5_row, b5)


def bid_forward(landlord, prepped, *, max_batch_tile=512):
    """landlord: int32 [B, L] indices in [0, 31). Returns float32 [B, 1]."""
    B, L = landlord.shape

    # Batch tile: multiple of 8 sublanes, capped so double-buffered activations
    # fit comfortably inside even v7x's smaller VMEM.
    TB = min(max_batch_tile, _round_up(B, 8))
    B_pad = _round_up(B, TB)
    if B_pad != B:
        landlord = jnp.pad(landlord, ((0, B_pad - B), (0, 0)))   # idx 0 is valid
    grid = (B_pad // TB,)

    weights = prepped
    in_specs = [pl.BlockSpec((TB, L), lambda i: (i, 0))]          # batch-tiled idx
    # Weights/biases: single full block, constant index -> VMEM-resident.
    in_specs += [pl.BlockSpec(wt.shape, lambda i: (0, 0)) for wt in weights]

    out = pl.pallas_call(
        bid_kernel,
        out_shape=jax.ShapeDtypeStruct((B_pad, OUT), jnp.float32),
        grid=grid,
        in_specs=in_specs,
        out_specs=pl.BlockSpec((TB, OUT), lambda i: (i, 0)),
        compiler_params=pltpu.CompilerParams(
            dimension_semantics=("parallel",),
            vmem_limit_bytes=32 * 1024 * 1024),
    )(landlord, *weights)
    return out[:B]


def bid_reference(landlord, params):
    """Plain-JAX f32 reference matching the PyTorch forward exactly."""
    (embed, w1, b1, w2, b2, w3, b3, w4, b4, w5, b5) = params
    x = embed[landlord]                    # (B, L, 256)  == nn.Embedding
    x = jnp.mean(x, axis=1)                # (B, 256)
    x = jax.nn.relu(x @ w1 + b1)
    x = jax.nn.relu(x @ w2 + b2)
    x = jax.nn.relu(x @ w3 + b3)
    x = jax.nn.relu(x @ w4 + b4)
    return jax.nn.sigmoid(x @ w5 + b5)     # (B, 1)


if __name__ == "__main__":
    key = jax.random.PRNGKey(0)
    pkey, ikey = jax.random.split(key)

    params = init_params(pkey)

    B, L = 2, 8   # small batch of bid sequences, indices in [0, 31)
    landlord = jax.random.randint(ikey, (B, L), 0, VOCAB, dtype=jnp.int32)

    prepped = prepare_params(params, seq_len=L)
    out = bid_forward(landlord, prepped)
    out = jax.block_until_ready(out)

    ref = bid_reference(landlord, params)
    assert out.shape == (B, OUT)
    # bf16 MXU operands (f32 accumulation) vs. a pure-f32 reference: compare
    # with a tolerance comfortably above bf16 rounding for this tiny network.
    assert jnp.allclose(out, ref, atol=1e-2, rtol=1e-2), (out, ref)

    print("KERNEL_OK")
</pallas_src>

<mosaic_0001>
module attributes {stable_mosaic.version = 11 : i64} {
  func.func @bid_kernel(%arg0: i32, %arg1: memref<8x8xi32, #tpu.memory_space<vmem>>, %arg2: memref<32x256xbf16, #tpu.memory_space<vmem>>, %arg3: memref<256x128xbf16, #tpu.memory_space<vmem>>, %arg4: memref<1x128xf32, #tpu.memory_space<vmem>>, %arg5: memref<128x128xbf16, #tpu.memory_space<vmem>>, %arg6: memref<1x128xf32, #tpu.memory_space<vmem>>, %arg7: memref<128x128xbf16, #tpu.memory_space<vmem>>, %arg8: memref<1x128xf32, #tpu.memory_space<vmem>>, %arg9: memref<128x128xbf16, #tpu.memory_space<vmem>>, %arg10: memref<1x128xf32, #tpu.memory_space<vmem>>, %arg11: memref<1x128xf32, #tpu.memory_space<vmem>>, %arg12: memref<1x1xf32, #tpu.memory_space<vmem>>, %arg13: memref<8x1xf32, #tpu.memory_space<vmem>>) attributes {dimension_semantics = [#tpu.dimension_semantics<parallel>], iteration_bounds = array<i64: 1>, scalar_prefetch = 0 : i64, scratch_operands = 0 : i64, tpu.core_type = #tpu.core_type<tc>, window_params = [{transform_indices = @transform_0, window_bounds = array<i64: 8, 8>}, {pipeline_mode = #tpu.pipeline_mode<synchronous>, transform_indices = @transform_1, window_bounds = array<i64: 32, 256>}, {pipeline_mode = #tpu.pipeline_mode<synchronous>, transform_indices = @transform_2, window_bounds = array<i64: 256, 128>}, {pipeline_mode = #tpu.pipeline_mode<synchronous>, transform_indices = @transform_3, window_bounds = array<i64: 1, 128>}, {pipeline_mode = #tpu.pipeline_mode<synchronous>, transform_indices = @transform_4, window_bounds = array<i64: 128, 128>}, {pipeline_mode = #tpu.pipeline_mode<synchronous>, transform_indices = @transform_5, window_bounds = array<i64: 1, 128>}, {pipeline_mode = #tpu.pipeline_mode<synchronous>, transform_indices = @transform_6, window_bounds = array<i64: 128, 128>}, {pipeline_mode = #tpu.pipeline_mode<synchronous>, transform_indices = @transform_7, window_bounds = array<i64: 1, 128>}, {pipeline_mode = #tpu.pipeline_mode<synchronous>, transform_indices = @transform_8, window_bounds = array<i64: 128, 128>}, {pipeline_mode = #tpu.pipeline_mode<synchronous>, transform_indices = @transform_9, window_bounds = array<i64: 1, 128>}, {pipeline_mode = #tpu.pipeline_mode<synchronous>, transform_indices = @transform_10, window_bounds = array<i64: 1, 128>}, {pipeline_mode = #tpu.pipeline_mode<synchronous>, transform_indices = @transform_11, window_bounds = array<i64: 1, 1>}, {transform_indices = @transform_12, window_bounds = array<i64: 8, 1>}]} {
    %0 = tpu.iota {dimensions = array<i32: 1>} : vector<8x32xi32>
    %cst = arith.constant 0.000000e+00 : f32
    %1 = vector.broadcast %cst : f32 to vector<8x32xf32>
    %c0 = arith.constant 0 : index
    %c0_0 = arith.constant 0 : index
    %2 = vector.load %arg1[%c0, %c0_0] : memref<8x8xi32, #tpu.memory_space<vmem>>, vector<8x1xi32>
    %3 = vector.broadcast %2 : vector<8x1xi32> to vector<8x32xi32>
    %4 = arith.cmpi eq, %0, %3 : vector<8x32xi32>
    %5 = arith.extui %4 : vector<8x32xi1> to vector<8x32xi32>
    %6 = arith.sitofp %5 : vector<8x32xi32> to vector<8x32xf32>
    %7 = arith.addf %1, %6 : vector<8x32xf32>
    %c0_1 = arith.constant 0 : index
    %c1 = arith.constant 1 : index
    %8 = vector.load %arg1[%c0_1, %c1] : memref<8x8xi32, #tpu.memory_space<vmem>>, vector<8x1xi32>
    %9 = vector.broadcast %8 : vector<8x1xi32> to vector<8x32xi32>
    %10 = arith.cmpi eq, %0, %9 : vector<8x32xi32>
    %11 = arith.extui %10 : vector<8x32xi1> to vector<8x32xi32>
    %12 = arith.sitofp %11 : vector<8x32xi32> to vector<8x32xf32>
    %13 = arith.addf %7, %12 : vector<8x32xf32>
    %c0_2 = arith.constant 0 : index
    %c2 = arith.constant 2 : index
    %14 = vector.load %arg1[%c0_2, %c2] : memref<8x8xi32, #tpu.memory_space<vmem>>, vector<8x1xi32>
    %15 = vector.broadcast %14 : vector<8x1xi32> to vector<8x32xi32>
    %16 = arith.cmpi eq, %0, %15 : vector<8x32xi32>
    %17 = arith.extui %16 : vector<8x32xi1> to vector<8x32xi32>
    %18 = arith.sitofp %17 : vector<8x32xi32> to vector<8x32xf32>
    %19 = arith.addf %13, %18 : vector<8x32xf32>
    %c0_3 = arith.constant 0 : index
    %c3 = arith.constant 3 : index
    %20 = vector.load %arg1[%c0_3, %c3] : memref<8x8xi32, #tpu.memory_space<vmem>>, vector<8x1xi32>
    %21 = vector.broadcast %20 : vector<8x1xi32> to vector<8x32xi32>
    %22 = arith.cmpi eq, %0, %21 : vector<8x32xi32>
    %23 = arith.extui %22 : vector<8x32xi1> to vector<8x32xi32>
    %24 = arith.sitofp %23 : vector<8x32xi32> to vector<8x32xf32>
    %25 = arith.addf %19, %24 : vector<8x32xf32>
    %c0_4 = arith.constant 0 : index
    %c4 = arith.constant 4 : index
    %26 = vector.load %arg1[%c0_4, %c4] : memref<8x8xi32, #tpu.memory_space<vmem>>, vector<8x1xi32>
    %27 = vector.broadcast %26 : vector<8x1xi32> to vector<8x32xi32>
    %28 = arith.cmpi eq, %0, %27 : vector<8x32xi32>
    %29 = arith.extui %28 : vector<8x32xi1> to vector<8x32xi32>
    %30 = arith.sitofp %29 : vector<8x32xi32> to vector<8x32xf32>
    %31 = arith.addf %25, %30 : vector<8x32xf32>
    %c0_5 = arith.constant 0 : index
    %c5 = arith.constant 5 : index
    %32 = vector.load %arg1[%c0_5, %c5] : memref<8x8xi32, #tpu.memory_space<vmem>>, vector<8x1xi32>
    %33 = vector.broadcast %32 : vector<8x1xi32> to vector<8x32xi32>
    %34 = arith.cmpi eq, %0, %33 : vector<8x32xi32>
    %35 = arith.extui %34 : vector<8x32xi1> to vector<8x32xi32>
    %36 = arith.sitofp %35 : vector<8x32xi32> to vector<8x32xf32>
    %37 = arith.addf %31, %36 : vector<8x32xf32>
    %c0_6 = arith.constant 0 : index
    %c6 = arith.constant 6 : index
    %38 = vector.load %arg1[%c0_6, %c6] : memref<8x8xi32, #tpu.memory_space<vmem>>, vector<8x1xi32>
    %39 = vector.broadcast %38 : vector<8x1xi32> to vector<8x32xi32>
    %40 = arith.cmpi eq, %0, %39 : vector<8x32xi32>
    %41 = arith.extui %40 : vector<8x32xi1> to vector<8x32xi32>
    %42 = arith.sitofp %41 : vector<8x32xi32> to vector<8x32xf32>
    %43 = arith.addf %37, %42 : vector<8x32xf32>
    %c0_7 = arith.constant 0 : index
    %c7 = arith.constant 7 : index
    %44 = vector.load %arg1[%c0_7, %c7] : memref<8x8xi32, #tpu.memory_space<vmem>>, vector<8x1xi32>
    %45 = vector.broadcast %44 : vector<8x1xi32> to vector<8x32xi32>
    %46 = arith.cmpi eq, %0, %45 : vector<8x32xi32>
    %47 = arith.extui %46 : vector<8x32xi1> to vector<8x32xi32>
    %48 = arith.sitofp %47 : vector<8x32xi32> to vector<8x32xf32>
    %49 = arith.addf %43, %48 : vector<8x32xf32>
    %50 = arith.truncf %49 : vector<8x32xf32> to vector<8x32xbf16>
    %c0_8 = arith.constant 0 : index
    %c0_9 = arith.constant 0 : index
    %51 = vector.load %arg2[%c0_8, %c0_9] : memref<32x256xbf16, #tpu.memory_space<vmem>>, vector<32x256xbf16>
    %cst_10 = arith.constant dense<0.000000e+00> : vector<8x256xf32>
    %52 = tpu.matmul %50, %51, %cst_10 {dimension_numbers = #tpu.dot_dimension_numbers<[1], [0], [0], [1], [0, 0, 1, 1], [], []>} : vector<8x32xbf16>, vector<32x256xbf16>, vector<8x256xf32> -> vector<8x256xf32>
    %53 = arith.truncf %52 : vector<8x256xf32> to vector<8x256xbf16>
    %c0_11 = arith.constant 0 : index
    %c0_12 = arith.constant 0 : index
    %54 = vector.load %arg3[%c0_11, %c0_12] : memref<256x128xbf16, #tpu.memory_space<vmem>>, vector<256x128xbf16>
    %cst_13 = arith.constant dense<0.000000e+00> : vector<8x128xf32>
    %55 = tpu.matmul %53, %54, %cst_13 {dimension_numbers = #tpu.dot_dimension_numbers<[1], [0], [0], [1], [0, 0, 1, 1], [], []>} : vector<8x256xbf16>, vector<256x128xbf16>, vector<8x128xf32> -> vector<8x128xf32>
    %c0_14 = arith.constant 0 : index
    %c0_15 = arith.constant 0 : index
    %56 = vector.load %arg4[%c0_14, %c0_15] : memref<1x128xf32, #tpu.memory_space<vmem>>, vector<1x128xf32>
    %57 = vector.broadcast %56 : vector<1x128xf32> to vector<8x128xf32>
    %58 = arith.addf %55, %57 : vector<8x128xf32>
    %cst_16 = arith.constant 0.000000e+00 : f32
    %59 = vector.broadcast %cst_16 : f32 to vector<8x128xf32>
    %60 = arith.maximumf %58, %59 : vector<8x128xf32>
    %61 = arith.truncf %60 : vector<8x128xf32> to vector<8x128xbf16>
    %c0_17 = arith.constant 0 : index
    %c0_18 = arith.constant 0 : index
    %62 = vector.load %arg5[%c0_17, %c0_18] : memref<128x128xbf16, #tpu.memory_space<vmem>>, vector<128x128xbf16>
    %cst_19 = arith.constant dense<0.000000e+00> : vector<8x128xf32>
    %63 = tpu.matmul %61, %62, %cst_19 {dimension_numbers = #tpu.dot_dimension_numbers<[1], [0], [0], [1], [0, 0, 1, 1], [], []>} : vector<8x128xbf16>, vector<128x128xbf16>, vector<8x128xf32> -> vector<8x128xf32>
    %c0_20 = arith.constant 0 : index
    %c0_21 = arith.constant 0 : index
    %64 = vector.load %arg6[%c0_20, %c0_21] : memref<1x128xf32, #tpu.memory_space<vmem>>, vector<1x128xf32>
    %65 = vector.broadcast %64 : vector<1x128xf32> to vector<8x128xf32>
    %66 = arith.addf %63, %65 : vector<8x128xf32>
    %cst_22 = arith.constant 0.000000e+00 : f32
    %67 = vector.broadcast %cst_22 : f32 to vector<8x128xf32>
    %68 = arith.maximumf %66, %67 : vector<8x128xf32>
    %69 = arith.truncf %68 : vector<8x128xf32> to vector<8x128xbf16>
    %c0_23 = arith.constant 0 : index
    %c0_24 = arith.constant 0 : index
    %70 = vector.load %arg7[%c0_23, %c0_24] : memref<128x128xbf16, #tpu.memory_space<vmem>>, vector<128x128xbf16>
    %cst_25 = arith.constant dense<0.000000e+00> : vector<8x128xf32>
    %71 = tpu.matmul %69, %70, %cst_25 {dimension_numbers = #tpu.dot_dimension_numbers<[1], [0], [0], [1], [0, 0, 1, 1], [], []>} : vector<8x128xbf16>, vector<128x128xbf16>, vector<8x128xf32> -> vector<8x128xf32>
    %c0_26 = arith.constant 0 : index
    %c0_27 = arith.constant 0 : index
    %72 = vector.load %arg8[%c0_26, %c0_27] : memref<1x128xf32, #tpu.memory_space<vmem>>, vector<1x128xf32>
    %73 = vector.broadcast %72 : vector<1x128xf32> to vector<8x128xf32>
    %74 = arith.addf %71, %73 : vector<8x128xf32>
    %cst_28 = arith.constant 0.000000e+00 : f32
    %75 = vector.broadcast %cst_28 : f32 to vector<8x128xf32>
    %76 = arith.maximumf %74, %75 : vector<8x128xf32>
    %77 = arith.truncf %76 : vector<8x128xf32> to vector<8x128xbf16>
    %c0_29 = arith.constant 0 : index
    %c0_30 = arith.constant 0 : index
    %78 = vector.load %arg9[%c0_29, %c0_30] : memref<128x128xbf16, #tpu.memory_space<vmem>>, vector<128x128xbf16>
    %cst_31 = arith.constant dense<0.000000e+00> : vector<8x128xf32>
    %79 = tpu.matmul %77, %78, %cst_31 {dimension_numbers = #tpu.dot_dimension_numbers<[1], [0], [0], [1], [0, 0, 1, 1], [], []>} : vector<8x128xbf16>, vector<128x128xbf16>, vector<8x128xf32> -> vector<8x128xf32>
    %c0_32 = arith.constant 0 : index
    %c0_33 = arith.constant 0 : index
    %80 = vector.load %arg10[%c0_32, %c0_33] : memref<1x128xf32, #tpu.memory_space<vmem>>, vector<1x128xf32>
    %81 = vector.broadcast %80 : vector<1x128xf32> to vector<8x128xf32>
    %82 = arith.addf %79, %81 : vector<8x128xf32>
    %cst_34 = arith.constant 0.000000e+00 : f32
    %83 = vector.broadcast %cst_34 : f32 to vector<8x128xf32>
    %84 = arith.maximumf %82, %83 : vector<8x128xf32>
    %c0_35 = arith.constant 0 : index
    %c0_36 = arith.constant 0 : index
    %85 = vector.load %arg11[%c0_35, %c0_36] : memref<1x128xf32, #tpu.memory_space<vmem>>, vector<1x128xf32>
    %86 = vector.broadcast %85 : vector<1x128xf32> to vector<8x128xf32>
    %87 = arith.mulf %84, %86 : vector<8x128xf32>
    %cst_37 = arith.constant dense<0.000000e+00> : vector<8xf32>
    %88 = vector.multi_reduction <add>, %87, %cst_37 [1] : vector<8x128xf32> to vector<8xf32>
    %89 = vector.shape_cast %88 : vector<8xf32> to vector<8x1xf32>
    %c0_38 = arith.constant 0 : index
    %c0_39 = arith.constant 0 : index
    %90 = vector.load %arg12[%c0_38, %c0_39] : memref<1x1xf32, #tpu.memory_space<vmem>>, vector<1x1xf32>
    %91 = vector.broadcast %90 : vector<1x1xf32> to vector<8x1xf32>
    %92 = arith.addf %89, %91 : vector<8x1xf32>
    %cst_40 = arith.constant 0.000000e+00 : f32
    %93 = vector.broadcast %cst_40 : f32 to vector<8x1xf32>
    %94 = arith.subf %93, %92 : vector<8x1xf32>
    %95 = math.exp %94 : vector<8x1xf32>
    %cst_41 = arith.constant 1.000000e+00 : f32
    %96 = vector.broadcast %cst_41 : f32 to vector<8x1xf32>
    %97 = arith.addf %96, %95 : vector<8x1xf32>
    %98 = tpu.reciprocal %97 {approx = true} : vector<8x1xf32> -> vector<8x1xf32>
    %c0_42 = arith.constant 0 : index
    %c0_43 = arith.constant 0 : index
    %99 = vector.load %arg13[%c0_42, %c0_43] : memref<8x1xf32, #tpu.memory_space<vmem>>, vector<8x1xf32>
    tpu.vector_store %arg13[%c0_42, %c0_43], %98 {strides = array<i32>} : memref<8x1xf32, #tpu.memory_space<vmem>>, vector<8x1xf32>,
    return
  }
  func.func @transform_0(%arg0: i32) -> (i32, i32) {
    %c0_i32 = arith.constant 0 : i32
    %c0_i32_0 = arith.constant 0 : i32
    return %arg0, %c0_i32 : i32, i32
  }
  func.func @transform_1(%arg0: i32) -> (i32, i32) {
    %c0_i32 = arith.constant 0 : i32
    %c0_i32_0 = arith.constant 0 : i32
    %c0_i32_1 = arith.constant 0 : i32
    return %c0_i32, %c0_i32_0 : i32, i32
  }
  func.func @transform_2(%arg0: i32) -> (i32, i32) {
    %c0_i32 = arith.constant 0 : i32
    %c0_i32_0 = arith.constant 0 : i32
    %c0_i32_1 = arith.constant 0 : i32
    return %c0_i32, %c0_i32_0 : i32, i32
  }
  func.func @transform_3(%arg0: i32) -> (i32, i32) {
    %c0_i32 = arith.constant 0 : i32
    %c0_i32_0 = arith.constant 0 : i32
    %c0_i32_1 = arith.constant 0 : i32
    return %c0_i32, %c0_i32_0 : i32, i32
  }
  func.func @transform_4(%arg0: i32) -> (i32, i32) {
    %c0_i32 = arith.constant 0 : i32
    %c0_i32_0 = arith.constant 0 : i32
    %c0_i32_1 = arith.constant 0 : i32
    return %c0_i32, %c0_i32_0 : i32, i32
  }
  func.func @transform_5(%arg0: i32) -> (i32, i32) {
    %c0_i32 = arith.constant 0 : i32
    %c0_i32_0 = arith.constant 0 : i32
    %c0_i32_1 = arith.constant 0 : i32
    return %c0_i32, %c0_i32_0 : i32, i32
  }
  func.func @transform_6(%arg0: i32) -> (i32, i32) {
    %c0_i32 = arith.constant 0 : i32
    %c0_i32_0 = arith.constant 0 : i32
    %c0_i32_1 = arith.constant 0 : i32
    return %c0_i32, %c0_i32_0 : i32, i32
  }
  func.func @transform_7(%arg0: i32) -> (i32, i32) {
    %c0_i32 = arith.constant 0 : i32
    %c0_i32_0 = arith.constant 0 : i32
    %c0_i32_1 = arith.constant 0 : i32
    return %c0_i32, %c0_i32_0 : i32, i32
  }
  func.func @transform_8(%arg0: i32) -> (i32, i32) {
    %c0_i32 = arith.constant 0 : i32
    %c0_i32_0 = arith.constant 0 : i32
    %c0_i32_1 = arith.constant 0 : i32
    return %c0_i32, %c0_i32_0 : i32, i32
  }
  func.func @transform_9(%arg0: i32) -> (i32, i32) {
    %c0_i32 = arith.constant 0 : i32
    %c0_i32_0 = arith.constant 0 : i32
    %c0_i32_1 = arith.constant 0 : i32
    return %c0_i32, %c0_i32_0 : i32, i32
  }
  func.func @transform_10(%arg0: i32) -> (i32, i32) {
    %c0_i32 = arith.constant 0 : i32
    %c0_i32_0 = arith.constant 0 : i32
    %c0_i32_1 = arith.constant 0 : i32
    return %c0_i32, %c0_i32_0 : i32, i32
  }
  func.func @transform_11(%arg0: i32) -> (i32, i32) {
    %c0_i32 = arith.constant 0 : i32
    %c0_i32_0 = arith.constant 0 : i32
    %c0_i32_1 = arith.constant 0 : i32
    return %c0_i32, %c0_i32_0 : i32, i32
  }
  func.func @transform_12(%arg0: i32) -> (i32, i32) {
    %c0_i32 = arith.constant 0 : i32
    %c0_i32_0 = arith.constant 0 : i32
    return %arg0, %c0_i32 : i32, i32
  }
}

</mosaic_0001>

<bundles_post_ra>
// kernel: tpu_custom_call.1
= control target key start
LH: loop header
LB: loop body
LE: loop exit
PB: predicated region body
PF: predicated region fallthrough
CT: control target
= control target key end

     0   :  { %s1352_s0 = inlined_call_operand.hbm [shape: s32[8,8], index: 0, kind: input, shape index: {}]   ;;  %s1353_s1 = inlined_call_operand.hbm [shape: bf16[32,256], index: 1, kind: input, shape index: {}]   ;;  %s1354_s2 = inlined_call_operand.hbm [shape: bf16[256,128], index: 2, kind: input, shape index: {}]   ;;  %s1355_s3 = inlined_call_operand.vmem [shape: f32[1,128], index: 3, kind: input, shape index: {}]   ;;  %s1356_s4 = inlined_call_operand.hbm [shape: bf16[128,128], index: 4, kind: input, shape index: {}]   ;;  %s1357_s5 = inlined_call_operand.vmem [shape: f32[1,128], index: 5, kind: input, shape index: {}]   ;;  %s1358_s6 = inlined_call_operand.hbm [shape: bf16[128,128], index: 6, kind: input, shape index: {}]   ;;  %s1359_s7 = inlined_call_operand.vmem [shape: f32[1,128], index: 7, kind: input, shape index: {}]   ;;  %s1360_s8 = inlined_call_operand.hbm [shape: bf16[128,128], index: 8, kind: input, shape index: {}]   ;;  %s1361_s9 = inlined_call_operand.vmem [shape: f32[1,128], index: 9, kind: input, shape index: {}]   ;;  %s1362_s10 = inlined_call_operand.vmem [shape: f32[1,128], index: 10, kind: input, shape index: {}]   ;;  %s1363_s11 = inlined_call_operand.<no memory space> [shape: f32[1,1], index: 11, kind: input, shape index: {}]   ;;  %s1364_s12 = inlined_call_operand.vmem [shape: f32[8,1], index: 12, kind: output, shape index: {}]  }
   0x1   :  { %v17_v0 = vstv %s1363_s11 }
   0x2   :  { %18 = vst [vmem:[#allocation2] sm:$0x1] %v17_v0 }
   0x3   :  { %19 = vsyncpa [#allocation4], 0 }
   0x4   :  { %20 = vsyncpa [#allocation6], 0 }
   0x5   :  { %21 = vsyncpa [#allocation9], 0 }
   0x6   :  { %22 = vsyncpa [#allocation12], 0  ;;  %s1178_s23 = smov [#allocation5]  }
   0x7   :  { %s38_s24 = sshll.u32 %s1178_s23, 4  ;;  %s39_s24 = int_to_ptr.vmem [resolvable:$true] %s38_s24 }
   0x8   :  { %s1058_s25 = scalar_lea.vmem %s39_s24, 512  ;;  %p1063_p1 = scmp.lt.s32.totalorder %s39_s24, %s39_s24 }
   0x9   :  { %p1059_p0 = scmp.ne.s32.totalorder %s39_s24, %s1058_s25  ;;  %p1064_p2 = scmp.lt.s32.totalorder %s1058_s25, %s1058_s25 }
   0xb   :  { %p1065_p3 = por %p1064_p2, %p1063_p1 }
   0xd   :  { %p1066_p4 = pnand %p1065_p3, %p1059_p0 }
   0xf   :  { %1069 = shalt.err (!%p1066_p4)
}
  0x10   :  { %s1179_s26 = smov 128   ;;  %s1180_s27 = smov 8  }
  0x11   :  { %44 = dma.hbm_to_vmem [thread:$0]  %s1353_s1, 512, %s39_s24, [#allocation6], %s1179_s26, %s1179_s26, %s1180_s27  }
  0x12   :  { %s1181_s11 = smov [#allocation8]   ;;  %s1182_s13 = smov [#allocation3]  }
  0x13   :  { %s64_s30 = sshll.u32 %s1181_s11, 4  ;;  %s29_s14 = sshll.u32 %s1182_s13, 4  ;;  %s65_s30 = int_to_ptr.vmem [resolvable:$true] %s64_s30  ;;  %s30_s14 = int_to_ptr.vmem [resolvable:$true] %s29_s14 }
  0x14   :  { %s1078_s15 = scalar_lea.vmem %s65_s30, 1024  ;;  %p1083_p6 = scmp.lt.s32.totalorder %s65_s30, %s65_s30 }
  0x15   :  { %p1079_p5 = scmp.ne.s32.totalorder %s65_s30, %s1078_s15  ;;  %p1084_p7 = scmp.lt.s32.totalorder %s1078_s15, %s1078_s15 }
  0x17   :  { %p1085_p8 = por %p1084_p7, %p1083_p6 }
  0x19   :  { %p1086_p9 = pnand %p1085_p8, %p1079_p5 }
  0x1b   :  { %1089 = shalt.err (!%p1086_p9)
}
  0x1c   :  { %s1183_s16 = smov 64   ;;  %s1184_s17 = smov 4  }
  0x1d   :  { %70 = dma.hbm_to_vmem [thread:$0]  %s1356_s4, 1024, %s65_s30, [#allocation9], %s1183_s16, %s1183_s16, %s1184_s17  }
  0x1e   :  { %s1098_s1 = scalar_lea.vmem %s30_s14, 128  ;;  %p1103_p11 = scmp.lt.s32.totalorder %s30_s14, %s30_s14 }
  0x1f   :  { %p1099_p10 = scmp.ne.s32.totalorder %s30_s14, %s1098_s1  ;;  %p1104_p12 = scmp.lt.s32.totalorder %s1098_s1, %s1098_s1 }
  0x21   :  { %p1105_p13 = por %p1104_p12, %p1103_p11 }
  0x23   :  { %p1106_p0 = pnand %p1105_p13, %p1099_p10 }
  0x25   :  { %1109 = shalt.err (!%p1106_p0)
}
  0x26   :  { %32 = dma.hbm_to_vmem [thread:$0]  %s1352_s0, 128, %s30_s14, [#allocation4]  }
  0x27   :  { %s1185_s22 = smov [#allocation7]   ;;  %s1186_s24 = smov [#allocation10]  }
  0x28   :  { %s50_s23 = sshll.u32 %s1185_s22, 4  ;;  %s78_s25 = sshll.u32 %s1186_s24, 4  ;;  %s51_s23 = int_to_ptr.vmem [resolvable:$true] %s50_s23  ;;  %s79_s25 = int_to_ptr.vmem [resolvable:$true] %s78_s25 }
  0x29   :  { %s1118_s26 = scalar_lea.vmem %s51_s23, 2048  ;;  %p1123_p2 = scmp.lt.s32.totalorder %s51_s23, %s51_s23 }
  0x2a   :  { %p1119_p1 = scmp.ne.s32.totalorder %s51_s23, %s1118_s26  ;;  %p1124_p3 = scmp.lt.s32.totalorder %s1118_s26, %s1118_s26 }
  0x2c   :  { %p1125_p4 = por %p1124_p3, %p1123_p2 }
  0x2e   :  { %p1126_p5 = pnand %p1125_p4, %p1119_p1 }
  0x30   :  { %1129 = shalt.err (!%p1126_p5)
}
  0x31   :  { %56 = dma.hbm_to_vmem [thread:$0]  %s1354_s2, 2048, %s51_s23, [#allocation6], %s1183_s16, %s1183_s16, %s1184_s17  }
  0x32   :  { %s1138_s0 = scalar_lea.vmem %s79_s25, 1024  ;;  %p1143_p7 = scmp.lt.s32.totalorder %s79_s25, %s79_s25 }
  0x33   :  { %p1139_p6 = scmp.ne.s32.totalorder %s79_s25, %s1138_s0  ;;  %p1144_p8 = scmp.lt.s32.totalorder %s1138_s0, %s1138_s0 }
  0x35   :  { %p1145_p9 = por %p1144_p8, %p1143_p7 }
  0x37   :  { %p1146_p10 = pnand %p1145_p9, %p1139_p6 }
  0x39   :  { %1149 = shalt.err (!%p1146_p10)
}
  0x3a   :  { %84 = dma.hbm_to_vmem [thread:$0]  %s1358_s6, 1024, %s79_s25, [#allocation9], %s1183_s16, %s1183_s16, %s1184_s17  }
  0x3b   :  { %s1187_s11 = smov [#allocation11]  }
  0x3c   :  { %s92_s30 = sshll.u32 %s1187_s11, 4  ;;  %s93_s30 = int_to_ptr.vmem [resolvable:$true] %s92_s30 }
  0x3d   :  { %s1158_s13 = scalar_lea.vmem %s93_s30, 1024  ;;  %p1163_p12 = scmp.lt.s32.totalorder %s93_s30, %s93_s30 }
  0x3e   :  { %p1159_p11 = scmp.ne.s32.totalorder %s93_s30, %s1158_s13  ;;  %p1164_p13 = scmp.lt.s32.totalorder %s1158_s13, %s1158_s13 }
  0x40   :  { %p1165_p0 = por %p1164_p13, %p1163_p12 }
  0x42   :  { %p1166_p1 = pnand %p1165_p0, %p1159_p11 }
  0x44   :  { %1169 = shalt.err (!%p1166_p1)
}
  0x45   :  { %98 = dma.hbm_to_vmem [thread:$0]  %s1360_s8, 1024, %s93_s30, [#allocation12], %s1183_s16, %s1183_s16, %s1184_s17  }
  0x46   :  { %1170 = dma.done.wait [#allocation4], 128  }
  0x47   :  { %1171 = vsyncadd [#allocation4], 4294967168 }
  0x48   :  { %1172 = dma.done.wait [#allocation6], 2560  }
  0x49   :  { %1173 = vsyncadd [#allocation6], 4294964736 }
  0x4a   :  { %1174 = dma.done.wait [#allocation9], 2048  }
  0x4b   :  { %1175 = vsyncadd [#allocation9], 4294965248 }
  0x4c   :  { %1176 = dma.done.wait [#allocation12], 1024  }
  0x4d   :  { %1177 = vsyncadd [#allocation12], 4294966272  ;;  %v1188_v1 = vmov 2   ;;  %v1189_v2 = vmov 0   ;;  %v126_v3 = vld [vmem:[#allocation3] sm:$0xff]  ;;  %v1190_v4 = vmov 3   ;;  %v124_v29 = vlaneseq }
  0x4e   :  { %993 = vset.pattern.permute.xlu1 %v1188_v1  ;;  %991 = vset.pattern.permute.xlu0 %v1189_v2  ;;  %v1191_v5 = vmov 1   ;;  %v1192_v6 = vmov 4   ;;  %v1193_v7 = vmov 5   ;;  %v1000_v8 = vld [vmem:[#allocation5 + $0x14] ss:$8 sps:$4 sm:$0xff]   ;;  %v1194_v10 = vmov 6  }
  0x4f   :  { %244 = vmatprep.mubr.bf16.mxu0 %v1189_v2  ;;  %142 = vperm.xlu1 %993, %v126_v3   ;;  %v1002_v9 = vld [vmem:[#allocation5 + $0x10] ss:$8 sps:$4 sm:$0xff]   ;;  %v1003_v11 = vld [vmem:[#allocation5 + $0x4] ss:$8 sps:$4 sm:$0xff]   ;;  %v1195_v12 = vmov 7   ;;  %v1196_v14 = vmov 0.0  }
  0x50   :  { %128 = vperm.xlu0 %991, %v126_v3   ;;  %224 = vmatprep.subr.bf16.mxu0 %v1000_v8  ;;  %v1005_v13 = vld [vmem:[#allocation5] ss:$8 sps:$4 sm:$0xff]   ;;  %v1006_v15 = vld [vmem:[#allocation7 + $0x78] sm:$0xff]   ;;  %v1008_v17 = vld [vmem:[#allocation7 + $0x70] sm:$0xff]   ;;  %v125_v32 = vand.u32 127, %v124_v29  ;;  %vm208_vm8 = vcmask 261120  }
  0x51   :  { %225 = vmatpush1.bf16.msra.mxu0 %v1002_v9  ;;  %v1007_v16 = vld [vmem:[#allocation7 + $0x38] sm:$0xff]   ;;  %862 = vmatprep.subr.bf16.mxu1 %v1006_v15  ;;  %v1009_v18 = vld [vmem:[#allocation7 + $0x30] sm:$0xff]   ;;  %v1010_v19 = vld [vmem:[#allocation7 + $0x68] sm:$0xff]   ;;  %vm1197_vm9 = vmmov 0   ;;  %vm793_vm10 = vcmask 7168  }
  0x52   :  { %226 = vmatprep.subr.bf16.mxu0 %v1003_v11  ;;  %863 = vmatpush3.bf16.msra.mxu1 %v1007_v16  ;;  %v1011_v20 = vld [vmem:[#allocation7 + $0x28] sm:$0xff]   ;;  %v1012_v21 = vld [vmem:[#allocation7 + $0x60] sm:$0xff]   ;;  %v1014_v23 = vld [vmem:[#allocation7 + $0x58] sm:$0xff]  }
  0x53   :  { %994 = vset.pattern.permute.xlu1 %v1190_v4  ;;  %864 = vmatprep.subr.bf16.mxu1 %v1008_v17  ;;  %v1013_v22 = vld [vmem:[#allocation7 + $0x20] sm:$0xff]   ;;  %v1015_v24 = vld [vmem:[#allocation7 + $0x18] sm:$0xff]   ;;  %v1016_v25 = vld [vmem:[#allocation7 + $0x50] sm:$0xff]  }
  0x54   :  { %992 = vset.pattern.permute.xlu0 %v1191_v5  ;;  %149 = vperm.xlu1 %994, %v126_v3   ;;  %v1017_v26 = vld [vmem:[#allocation7 + $0x10] sm:$0xff]   ;;  %v1018_v27 = vld [vmem:[#allocation7 + $0x48] sm:$0xff]   ;;  %v1020_v55 = vld [vmem:[#allocation7 + $0x40] sm:$0xff]  }
  0x55   :  { %135 = vperm.xlu0 %992, %v126_v3   ;;  %227 = vmatpush1.bf16.msra.mxu0 %v1005_v13  ;;  %v1019_v28 = vld [vmem:[#allocation7 + $0x8] sm:$0xff]   ;;  %v1021_v56 = vld [vmem:[#allocation7] sm:$0xff]   ;;  %v1022_v57 = vld [vmem:[#allocation8 + $0x38] sm:$0xff]  }
  0x56   :  { %911 = vmatprep.subr.bf16.mxu0 %v1196_v14  ;;  %865 = vmatpush3.bf16.msra.mxu1 %v1009_v18  ;;  %v1023_v58 = vld [vmem:[#allocation8 + $0x30] sm:$0xff]   ;;  %v1024_v59 = vld [vmem:[#allocation8 + $0x28] sm:$0xff]   ;;  %v1025_v60 = vld [vmem:[#allocation8 + $0x20] sm:$0xff]  }
  0x57   :  { %866 = vmatprep.subr.bf16.mxu1 %v1010_v19  ;;  %v1026_v61 = vld [vmem:[#allocation8 + $0x18] sm:$0xff]   ;;  %v1027_v4 = vld [vmem:[#allocation8 + $0x10] sm:$0xff]   ;;  %v1028_v5 = vld [vmem:[#allocation8 + $0x8] sm:$0xff]  }
  0x58   :  { %995 = vset.pattern.permute.xlu1 %v1192_v6  ;;  %v1029_v6 = vld [vmem:[#allocation8] sm:$0xff]   ;;  %v1031_v8 = vld [vmem:[#allocation10 + $0x30] sm:$0xff]   ;;  %v1032_v9 = vld [vmem:[#allocation10 + $0x28] sm:$0xff]  }
  0x59   :  { %996 = vset.pattern.permute.xlu0 %v1193_v7  ;;  %156 = vperm.xlu1 %995, %v126_v3   ;;  %v1030_v7 = vld [vmem:[#allocation10 + $0x38] sm:$0xff]   ;;  %v816_v15 = vld [vmem:[%s1355_s3] ss:$0 sm:$0xff] }
  0x5a   :  { %163 = vperm.xlu0 %996, %v126_v3   ;;  %867 = vmatpush3.bf16.msra.mxu1 %v1011_v20  ;;  %v1034_v11 = vld [vmem:[#allocation10 + $0x18] sm:$0xff]  }
  0x5b   :  { %868 = vmatprep.subr.bf16.mxu1 %v1012_v21  ;;  %v1042_v29 = vld [vmem:[#allocation11 + $0x18] sm:$0xff]  }
  0x5d   :  { %997 = vset.pattern.permute.xlu1 %v1194_v10  ;;  %v1033_v10 = vld [vmem:[#allocation10 + $0x20] sm:$0xff]  }
  0x5e   :  { %170 = vperm.xlu1 %997, %v126_v3   ;;  %999 = vset.pattern.permute.xlu0 %v1195_v12 }
  0x5f   :  { %869 = vmatpush3.bf16.msra.mxu1 %v1013_v22 }
  0x60   :  { %870 = vmatprep.subr.bf16.mxu1 %v1014_v23  ;;  %v1036_v23 = vld [vmem:[#allocation10 + $0x8] sm:$0xff]  }
  0x62   :  { %998 = vset.pattern.permute.xlu1 %v1195_v12  ;;  %v1035_v12 = vld [vmem:[#allocation10 + $0x10] sm:$0xff]  }
  0x63   :  { %177 = vperm.xlu1 %998, %v126_v3   ;;  %871 = vmatpush3.bf16.msra.mxu1 %v1015_v24  ;;  %v1037_v24 = vld [vmem:[#allocation10] sm:$0xff]  }
  0x64   :  { %872 = vmatprep.subr.bf16.mxu1 %v1016_v25  ;;  %v1038_v25 = vld [vmem:[#allocation11 + $0x38] sm:$0xff]  }
  0x67   :  { %873 = vmatpush3.bf16.msra.mxu1 %v1017_v26  ;;  %v1039_v26 = vld [vmem:[#allocation11 + $0x30] sm:$0xff]  }
  0x68   :  { %874 = vmatprep.subr.bf16.mxu1 %v1018_v27  ;;  %v1040_v27 = vld [vmem:[#allocation11 + $0x28] sm:$0xff]  }
  0x6b   :  { %875 = vmatpush3.bf16.msra.mxu1 %v1019_v28  ;;  %v1041_v28 = vld [vmem:[#allocation11 + $0x20] sm:$0xff]  }
  0x6c   :  { %876 = vmatprep.subr.bf16.mxu1 %v1020_v55 }
  0x6f   :  { %877 = vmatpush3.bf16.msra.mxu1 %v1021_v56 }
  0x70   :  { %931 = vmatprep.subr.bf16.mxu1 %v1196_v14 }
  0xca   :  { %v143_v30 = vpop.permute.xlu1 %142 }
  0xcb   :  { %v129_v31 = vpop.permute.xlu0 %128  ;;  %vm144_vm1 = vcmp.eq.s32.totalorder %v125_v32, %v143_v30  ;;  %v1043_v30 = vld [vmem:[#allocation11 + $0x10] sm:$0xff]  }
  0xcc   :  { %vm130_vm0 = vcmp.eq.s32.totalorder %v125_v32, %v129_v31  ;;  %v805_v38 = vsel %vm144_vm1, 1.0, %v1196_v14  ;;  %v833_v31 = vld [vmem:[%s1357_s5] ss:$0 sm:$0xff] }
  0xcd   :  { %v803_v35 = vsel %vm130_vm0, 1.0, %v1196_v14 }
  0xcf   :  { %v150_v33 = vpop.permute.xlu1 %149 }
  0xd0   :  { %v136_v34 = vpop.permute.xlu0 %135  ;;  %vm151_vm3 = vcmp.eq.s32.totalorder %v125_v32, %v150_v33 }
  0xd1   :  { %vm137_vm2 = vcmp.eq.s32.totalorder %v125_v32, %v136_v34  ;;  %v806_v42 = vsel %vm151_vm3, 1.0, %v1196_v14 }
  0xd2   :  { %v804_v36 = vsel %vm137_vm2, 1.0, %v1196_v14 }
  0xd3   :  { %v140_v37 = vadd.f32 %v804_v36, %v803_v35 }
  0xd4   :  { %v157_v40 = vpop.permute.xlu1 %156 }
  0xd5   :  { %v147_v39 = vadd.f32 %v805_v38, %v140_v37  ;;  %v164_v41 = vpop.permute.xlu0 %163  ;;  %vm158_vm4 = vcmp.eq.s32.totalorder %v125_v32, %v157_v40  ;;  %v1045_v40 = vld [vmem:[#allocation11] sm:$0xff]  }
  0xd6   :  { %vm165_vm5 = vcmp.eq.s32.totalorder %v125_v32, %v164_v41  ;;  %v807_v44 = vsel %vm158_vm4, 1.0, %v1196_v14  ;;  %v842_v41 = vld [vmem:[%s1359_s7] ss:$0 sm:$0xff] }
  0xd7   :  { %v154_v43 = vadd.f32 %v806_v42, %v147_v39  ;;  %v808_v46 = vsel %vm165_vm5, 1.0, %v1196_v14  ;;  %v1044_v39 = vld [vmem:[#allocation11 + $0x8] sm:$0xff]  }
  0xd9   :  { %v161_v45 = vadd.f32 %v807_v44, %v154_v43  ;;  %v171_v47 = vpop.permute.xlu1 %170 }
  0xda   :  { %vm172_vm6 = vcmp.eq.s32.totalorder %v125_v32, %v171_v47 }
  0xdb   :  { %v168_v48 = vadd.f32 %v808_v46, %v161_v45  ;;  %v809_v49 = vsel %vm172_vm6, 1.0, %v1196_v14 }
  0xdd   :  { %v175_v51 = vadd.f32 %v809_v49, %v168_v48  ;;  %v851_v49 = vld [vmem:[%s1361_s9] ss:$0 sm:$0xff] }
  0xde   :  { %v178_v50 = vpop.permute.xlu1 %177 }
  0xdf   :  { %vm179_vm7 = vcmp.eq.s32.totalorder %v125_v32, %v178_v50 }
  0xe0   :  { %v810_v52 = vsel %vm179_vm7, 1.0, %v1196_v14 }
  0xe1   :  { %v182_v53 = vadd.f32 %v810_v52, %v175_v51  ;;  %v860_v52 = vld [vmem:[%s1362_s10] ss:$0 sm:$0xff] }
  0xe3   :  { %v183_v54 = vpack.c.bf16 %v182_v53, %v182_v53 }
  0xe5   :  { %815 = vmatmul.mubr.msk.bf16.vlgmr.msra.gmra.mxu0 %vm208_vm8, %v183_v54 }
  0xe6   :  { %912 = vmatpush3.bf16.msra.mxu0 %v1022_v57  ;;  %927 = vmatprep.mubr.msk.bf16.mxu0 %vm1197_vm9, %v1196_v14  ;;  %v861_v57 = vld [vmem:[#allocation2] ss:$0 sm:$0xff] }
  0xe7   :  { %913 = vmatprep.subr.bf16.mxu0 %v1196_v14 }
  0xea   :  { %914 = vmatpush3.bf16.msra.mxu0 %v1023_v58 }
  0xeb   :  { %915 = vmatprep.subr.bf16.mxu0 %v1196_v14 }
  0xee   :  { %916 = vmatpush3.bf16.msra.mxu0 %v1024_v59 }
  0xef   :  { %917 = vmatprep.subr.bf16.mxu0 %v1196_v14 }
  0xf2   :  { %918 = vmatpush3.bf16.msra.mxu0 %v1025_v60 }
  0xf3   :  { %919 = vmatprep.subr.bf16.mxu0 %v1196_v14 }
  0xf6   :  { %920 = vmatpush3.bf16.msra.mxu0 %v1026_v61 }
  0xf7   :  { %921 = vmatprep.subr.bf16.mxu0 %v1196_v14 }
  0xfa   :  { %922 = vmatpush3.bf16.msra.mxu0 %v1027_v4 }
  0xfb   :  { %923 = vmatprep.subr.bf16.mxu0 %v1196_v14 }
  0xfe   :  { %924 = vmatpush3.bf16.msra.mxu0 %v1028_v5 }
  0xff   :  { %925 = vmatprep.subr.bf16.mxu0 %v1196_v14 }
 0x102   :  { %926 = vmatpush3.bf16.msra.mxu0 %v1029_v6 }
 0x103   :  { %951 = vmatprep.subr.bf16.mxu0 %v1196_v14 }
 0x1a5   :  { %v246_v62 = vpop.f32.mrf.mxu0 }
 0x1a6   :  { %v253_v1 = vpack.c.bf16 %v246_v62, %v246_v62 }
 0x1a7   :  { %v248_v63 = vpop.f32.mrf.mxu0 }
 0x1a8   :  { %v254_v0 = vpack.c.bf16 %v248_v63, %v248_v63 }
 0x1a9   :  { %v250_v2 = vpop.f32.mrf.mxu0 }
 0x1aa   :  { %422 = vmatprep.mubr.bf16.mxu1 %v254_v0 }
 0x1ab   :  { %v251_v3 = vpop.f32.mrf.mxu0  ;;  %423 = vmatmul.mubr.bf16.vlgmr.msra.gmra.mxu1 %v253_v1 }
 0x1ac   :  { %947 = vmatprep.mubr.msk.bf16.mxu1 %vm1197_vm9, %v1196_v14  ;;  %932 = vmatpush3.bf16.msra.mxu1 %v1030_v7 }
 0x1ad   :  { %933 = vmatprep.subr.bf16.mxu1 %v1196_v14 }
 0x1b0   :  { %934 = vmatpush3.bf16.msra.mxu1 %v1031_v8 }
 0x1b1   :  { %935 = vmatprep.subr.bf16.mxu1 %v1196_v14 }
 0x1b4   :  { %936 = vmatpush3.bf16.msra.mxu1 %v1032_v9 }
 0x1b5   :  { %937 = vmatprep.subr.bf16.mxu1 %v1196_v14 }
 0x1b8   :  { %938 = vmatpush3.bf16.msra.mxu1 %v1033_v10 }
 0x1b9   :  { %939 = vmatprep.subr.bf16.mxu1 %v1196_v14 }
 0x1bc   :  { %940 = vmatpush3.bf16.msra.mxu1 %v1034_v11 }
 0x1bd   :  { %941 = vmatprep.subr.bf16.mxu1 %v1196_v14 }
 0x1c0   :  { %942 = vmatpush3.bf16.msra.mxu1 %v1035_v12 }
 0x1c1   :  { %943 = vmatprep.subr.bf16.mxu1 %v1196_v14 }
 0x1c4   :  { %944 = vmatpush3.bf16.msra.mxu1 %v1036_v23 }
 0x1c5   :  { %945 = vmatprep.subr.bf16.mxu1 %v1196_v14 }
 0x1c8   :  { %946 = vmatpush3.bf16.msra.mxu1 %v1037_v24 }
 0x26b   :  { %v878_v13 = vpop.f32.mrf.mxu1 }
 0x26d   :  { %v879_v16 = vpop.f32.mrf.mxu1 }
 0x26e   :  { %v880_v17 = vadd.f32 %v879_v16, %v878_v13 }
 0x26f   :  { %v881_v18 = vpop.f32.mrf.mxu1 }
 0x270   :  { %v425_v19 = vadd.f32 %v880_v17, %v816_v15 }
 0x271   :  { %v882_v20 = vpop.f32.mrf.mxu1 }
 0x272   :  { %v430_v21 = vmax.f32 %v425_v19, 0.0 }
 0x274   :  { %v431_v22 = vpack.c.bf16 %v430_v21, %v430_v21 }
 0x276   :  { %928 = vmatmul.mubr.bf16.vlgmr.msra.gmra.mxu0 %v431_v22 }
 0x277   :  { %967 = vmatprep.mubr.msk.bf16.mxu0 %vm1197_vm9, %v1196_v14  ;;  %952 = vmatpush3.bf16.msra.mxu0 %v1038_v25 }
 0x278   :  { %953 = vmatprep.subr.bf16.mxu0 %v1196_v14 }
 0x27b   :  { %954 = vmatpush3.bf16.msra.mxu0 %v1039_v26 }
 0x27c   :  { %955 = vmatprep.subr.bf16.mxu0 %v1196_v14 }
 0x27f   :  { %956 = vmatpush3.bf16.msra.mxu0 %v1040_v27 }
 0x280   :  { %957 = vmatprep.subr.bf16.mxu0 %v1196_v14 }
 0x283   :  { %958 = vmatpush3.bf16.msra.mxu0 %v1041_v28 }
 0x284   :  { %959 = vmatprep.subr.bf16.mxu0 %v1196_v14 }
 0x287   :  { %960 = vmatpush3.bf16.msra.mxu0 %v1042_v29 }
 0x288   :  { %961 = vmatprep.subr.bf16.mxu0 %v1196_v14 }
 0x28b   :  { %962 = vmatpush3.bf16.msra.mxu0 %v1043_v30 }
 0x28c   :  { %963 = vmatprep.subr.bf16.mxu0 %v1196_v14 }
 0x28f   :  { %964 = vmatpush3.bf16.msra.mxu0 %v1044_v39 }
 0x290   :  { %965 = vmatprep.subr.bf16.mxu0 %v1196_v14 }
 0x293   :  { %966 = vmatpush3.bf16.msra.mxu0 %v1045_v40 }
 0x336   :  { %v537_v32 = vpop.f32.mrf.mxu0 }
 0x337   :  { %v538_v33 = vadd.f32 %v833_v31, %v537_v32 }
 0x338   :  { %v929_v34 = vpop.f32.mrf.mxu0 }
 0x339   :  { %v543_v35 = vmax.f32 %v538_v33, 0.0 }
 0x33a   :  { %v540_v36 = vpop.f32.mrf.mxu0 }
 0x33b   :  { %v544_v37 = vpack.c.bf16 %v543_v35, %v543_v35 }
 0x33c   :  { %v930_v38 = vpop.f32.mrf.mxu0 }
 0x33d   :  { %948 = vmatmul.mubr.bf16.vlgmr.msra.gmra.mxu1 %v544_v37 }
 0x3fd   :  { %v650_v42 = vpop.f32.mrf.mxu1 }
 0x3fe   :  { %v651_v43 = vadd.f32 %v842_v41, %v650_v42 }
 0x3ff   :  { %v949_v44 = vpop.f32.mrf.mxu1 }
 0x400   :  { %v656_v45 = vmax.f32 %v651_v43, 0.0 }
 0x401   :  { %v653_v46 = vpop.f32.mrf.mxu1 }
 0x402   :  { %v657_v47 = vpack.c.bf16 %v656_v45, %v656_v45 }
 0x403   :  { %v950_v48 = vpop.f32.mrf.mxu1 }
 0x404   :  { %968 = vmatmul.mubr.bf16.vlgmr.msra.gmra.mxu0 %v657_v47 }
 0x4c4   :  { %v763_v50 = vpop.f32.mrf.mxu0 }
 0x4c5   :  { %v764_v14 = vadd.f32 %v851_v49, %v763_v50 }
 0x4c6   :  { %v969_v51 = vpop.f32.mrf.mxu0 }
 0x4c7   :  { %v769_v53 = vmax.f32 %v764_v14, 0.0 }
 0x4c8   :  { %v766_v54 = vpop.f32.mrf.mxu0 }
 0x4c9   :  { %v777_v55 = vmul.f32 %v860_v52, %v769_v53 }
 0x4ca   :  { %v970_v56 = vpop.f32.mrf.mxu0 }
 0x4cb   :  { %778 = vadd.xlane.f32.xlu0 %v777_v55 }
 0x554   :  { %v779_v58 = vpop.xlane.xlu0 %778 }
 0x555   :  { %v787_v59 = vadd.f32 %v861_v57, %v779_v58 }
 0x557   :  { %v788_v60 = vsub.f32 0.0, %v787_v59 }
 0x559   :  { %v789_v61 = vmul.f32 1.442695, %v788_v60 }
 0x55b   :  { %1046 = vpow2.f32 %v789_v61 }
 0x568   :  { %v1047_v62 = vpop.eup %1046 }
 0x569   :  { %v791_v63 = vadd.f32 1.0, %v1047_v62 }
 0x56b   :  { %1048 = vrcp.f32 %v791_v63 }
 0x578   :  { %v1049_v0 = vpop.eup %1048 }
 0x579   :  { %794 = vst.msk [vmem:[%s1364_s12] sm:$0xff] %vm793_vm10, %v1049_v0 }
 0x57a   :  { %799 = vsyncpa [#allocation4], 1 }
 0x57b   :  { %800 = vsyncpa [#allocation6], 1 }
 0x57c   :  { %801 = vsyncpa [#allocation9], 1 }
 0x57d   :  { %802 = vsyncpa [#allocation12], 1 }

</bundles_post_ra>
